<compile_context>
chip_gen: v7x
topology: tpu7x:2x2x1
jax: 0.10.0
libtpu: 0.0.40
codegen_flags: <defaults>
</compile_context>

<pallas_src>
import jax
import jax.numpy as jnp
from jax import lax
from jax.experimental import pallas as pl
from jax.experimental.pallas import tpu as pltpu


def _policy_head_t_kernel(x_ref, w_ref, b_ref, logits_t_ref):
    # x: [tm, K], w: [N, K] (PyTorch layout), b: [N, 1].  out: [N, tm]
    # (lane-dense along the batch tile).  Contraction is over K for both
    # operands (same pattern as q @ k^T in attention kernels).
    acc_t = lax.dot_general(
        w_ref[...], x_ref[...],
        dimension_numbers=(((1,), (1,)), ((), ())),
        preferred_element_type=jnp.float32,
    )  # [N, tm], f32
    logits_t_ref[...] = (acc_t + b_ref[...]).astype(logits_t_ref.dtype)


def _policy_head_t_fused_kernel(x_ref, w_ref, b_ref, logits_t_ref, logp_t_ref):
    # Same matmul + bias, plus a fused, numerically stable log-softmax over the
    # action axis (axis 0 in the transposed layout -> dense sublane reduce on
    # the XLU, exp/log on the EUP) so logits never round-trip through HBM just
    # to compute Categorical log-probabilities.
    acc_t = lax.dot_general(
        w_ref[...], x_ref[...],
        dimension_numbers=(((1,), (1,)), ((), ())),
        preferred_element_type=jnp.float32,
    )
    logits_t = acc_t + b_ref[...]                              # [N, tm] f32
    logits_t_ref[...] = logits_t.astype(logits_t_ref.dtype)

    m = jnp.max(logits_t, axis=0, keepdims=True)               # [1, tm] (XLU)
    shifted = logits_t - m                                     # VPU
    lse = jnp.log(jnp.sum(jnp.exp(shifted), axis=0, keepdims=True))  # EUP+XLU
    logp_t_ref[...] = (shifted - lse).astype(logp_t_ref.dtype)


_TILE_CANDIDATES = (16384, 8192, 4096, 2048, 1024, 512, 256, 128)


def _pick_batch_tile(batch):
    """Pick a batch tile for the cdiv grid, or None for the grid-less path.

    Prefers the largest tile that yields >=2 grid steps (this kernel is
    HBM/overhead-bound, so bigger tiles win), with a mild preference for an
    even, >=4-step grid (v7x megacore balance) when that costs at most 2x the
    number of steps.
    """
    if batch <= 1024:
        return None  # single grid-less invocation; x fits trivially in VMEM
    best = None
    for tm in _TILE_CANDIDATES:
        n = -(-batch // tm)  # ceil-div
        if n < 2:
            continue
        if best is None:
            best = (tm, n)
        if n % 2 == 0 and n >= 4 and n <= 2 * best[1]:
            return tm
    return best[0] if best is not None else None


def policy_network_forward(x, weight, bias, *, return_log_probs=False,
                           transposed_output=False):
    """Pallas forward pass for PolicyNetwork.

    Args:
      x:      [batch, in_features] float32 (or bfloat16 from the producer).
      weight: [num_actions, in_features] (PyTorch nn.Linear layout).
      bias:   [num_actions].
      return_log_probs: if True, also return fused log-softmax(logits) (f32).
      transposed_output: if True, return the lane-dense [num_actions, batch]
        slab(s) directly (no wrapper transpose).

    Returns:
      logits [batch, num_actions] (or transposed), optionally with log_probs.
    """
    batch, in_features = x.shape
    num_actions, k = weight.shape
    assert k == in_features, "weight must be [num_actions, in_features]"
    assert bias.shape == (num_actions,)

    # Tiny one-time parameter prep (1 KiB): match weight dtype to x for the
    # MXU, and pre-shape bias to [N, 1] so the kernel never reshapes a 1-D ref.
    w = weight if weight.dtype == x.dtype else weight.astype(x.dtype)
    b2 = bias.reshape(num_actions, 1).astype(jnp.float32)

    kernel = _policy_head_t_fused_kernel if return_log_probs else _policy_head_t_kernel
    if return_log_probs:
        out_shape = (
            jax.ShapeDtypeStruct((num_actions, batch), x.dtype),
            jax.ShapeDtypeStruct((num_actions, batch), jnp.float32),
        )
    else:
        out_shape = jax.ShapeDtypeStruct((num_actions, batch), x.dtype)

    itemsize = jnp.dtype(x.dtype).itemsize
    out_bytes = batch * num_actions * (itemsize + (4 if return_log_probs else 0))
    cost = pl.CostEstimate(
        flops=2 * batch * in_features * num_actions,
        transcendentals=(batch * (num_actions + 1)) if return_log_probs else 0,
        bytes_accessed=batch * in_features * itemsize
        + num_actions * in_features * itemsize
        + num_actions * 4
        + out_bytes,
    )

    tm = _pick_batch_tile(batch)

    if tm is None:
        # Small-batch / fixed-overhead regime: single invocation, no grid, no
        # pipelining machinery; everything resident in VMEM for one call.
        vmem = pl.BlockSpec(memory_space=pltpu.MemorySpace.VMEM)
        out_specs = (vmem, vmem) if return_log_probs else vmem
        outs = pl.pallas_call(
            kernel,
            out_shape=out_shape,
            in_specs=[vmem, vmem, vmem],
            out_specs=out_specs,
            cost_estimate=cost,
        )(x, w, b2)
    else:
        # Large rollout batch: tile only the batch axis (cdiv grid -> Pallas
        # masks the partial edge tile); weight/bias stay resident.  Batch axis
        # is "parallel" so v7x's two TensorCores split the tiles.
        grid = (-(-batch // tm),)
        x_spec = pl.BlockSpec((tm, in_features), lambda i: (i, 0))
        w_spec = pl.BlockSpec((num_actions, in_features), lambda i: (0, 0))
        b_spec = pl.BlockSpec((num_actions, 1), lambda i: (0, 0))
        o_spec = pl.BlockSpec((num_actions, tm), lambda i: (0, i))
        out_specs = (o_spec, o_spec) if return_log_probs else o_spec
        outs = pl.pallas_call(
            kernel,
            out_shape=out_shape,
            grid=grid,
            in_specs=[x_spec, w_spec, b_spec],
            out_specs=out_specs,
            compiler_params=pltpu.CompilerParams(
                dimension_semantics=("parallel",),
            ),
            cost_estimate=cost,
        )(x, w, b2)

    if return_log_probs:
        logits_t, logp_t = outs
        if transposed_output:
            return logits_t, logp_t
        return logits_t.T, logp_t.T
    logits_t = outs
    return logits_t if transposed_output else logits_t.T


if __name__ == "__main__":
    in_features = 32      # input_shape[0]
    num_actions = 8

    key = jax.random.PRNGKey(0)
    kx, kw, kb, kx2 = jax.random.split(key, 4)

    # --- Small batch, module-faithful zero init (grid-less path) ---
    batch = 8
    x = jax.random.normal(kx, (batch, in_features), dtype=jnp.float32)
    weight = jnp.zeros((num_actions, in_features), dtype=jnp.float32)
    bias = jnp.zeros((num_actions,), dtype=jnp.float32)

    logits = policy_network_forward(x, weight, bias)
    logits = jax.block_until_ready(logits)
    ref = x @ weight.T + bias
    assert logits.shape == (batch, num_actions)
    assert jnp.allclose(logits, ref, atol=1e-5), "mismatch vs reference (zero init)"

    # --- Small batch, random params, fused log-softmax ---
    w_rand = 0.1 * jax.random.normal(kw, (num_actions, in_features), dtype=jnp.float32)
    b_rand = 0.1 * jax.random.normal(kb, (num_actions,), dtype=jnp.float32)
    logits2, logp2 = policy_network_forward(x, w_rand, b_rand, return_log_probs=True)
    logits2, logp2 = jax.block_until_ready((logits2, logp2))
    ref2 = x @ w_rand.T + b_rand
    assert jnp.allclose(logits2, ref2, atol=1e-4, rtol=1e-4), "logits mismatch"
    assert jnp.allclose(
        logp2, jax.nn.log_softmax(ref2, axis=-1), atol=1e-4, rtol=1e-4
    ), "log-softmax mismatch"

    # --- Tiled lane-dense path, non-divisible batch (cdiv grid + edge tile) ---
    big_batch = 4100
    xb = jax.random.normal(kx2, (big_batch, in_features), dtype=jnp.float32)
    logits3, logp3 = policy_network_forward(xb, w_rand, b_rand, return_log_probs=True)
    logits3, logp3 = jax.block_until_ready((logits3, logp3))
    ref3 = xb @ w_rand.T + b_rand
    assert logits3.shape == (big_batch, num_actions)
    assert jnp.allclose(logits3, ref3, atol=1e-4, rtol=1e-4), "tiled logits mismatch"
    assert jnp.allclose(
        logp3, jax.nn.log_softmax(ref3, axis=-1), atol=1e-4, rtol=1e-4
    ), "tiled log-softmax mismatch"

    print("KERNEL_OK")
</pallas_src>

<mosaic_0001>
module attributes {stable_mosaic.version = 11 : i64} {
  func.func @_policy_head_t_kernel(%arg0: memref<8x32xf32, #tpu.memory_space<vmem>>, %arg1: memref<8x32xf32, #tpu.memory_space<vmem>>, %arg2: memref<8x1xf32, #tpu.memory_space<vmem>>, %arg3: memref<8x8xf32, #tpu.memory_space<vmem>>) attributes {dimension_semantics = [], scalar_prefetch = 0 : i64, scratch_operands = 0 : i64, tpu.core_type = #tpu.core_type<tc>} {
    %c0 = arith.constant 0 : index
    %c0_0 = arith.constant 0 : index
    %0 = vector.load %arg1[%c0, %c0_0] : memref<8x32xf32, #tpu.memory_space<vmem>>, vector<8x32xf32>
    %c0_1 = arith.constant 0 : index
    %c0_2 = arith.constant 0 : index
    %1 = vector.load %arg0[%c0_1, %c0_2] : memref<8x32xf32, #tpu.memory_space<vmem>>, vector<8x32xf32>
    %cst = arith.constant dense<0.000000e+00> : vector<8x8xf32>
    %2 = tpu.matmul %0, %1, %cst {dimension_numbers = #tpu.dot_dimension_numbers<[1], [1], [0], [0], [0, 0, 1, 0], [], []>} : vector<8x32xf32>, vector<8x32xf32>, vector<8x8xf32> -> vector<8x8xf32>
    %c0_3 = arith.constant 0 : index
    %c0_4 = arith.constant 0 : index
    %3 = vector.load %arg2[%c0_3, %c0_4] : memref<8x1xf32, #tpu.memory_space<vmem>>, vector<8x1xf32>
    %4 = vector.broadcast %3 : vector<8x1xf32> to vector<8x8xf32>
    %5 = arith.addf %2, %4 : vector<8x8xf32>
    %c0_5 = arith.constant 0 : index
    %c0_6 = arith.constant 0 : index
    %6 = vector.load %arg3[%c0_5, %c0_6] : memref<8x8xf32, #tpu.memory_space<vmem>>, vector<8x8xf32>
    tpu.vector_store %arg3[%c0_5, %c0_6], %5 {strides = array<i32>} : memref<8x8xf32, #tpu.memory_space<vmem>>, vector<8x8xf32>,
    return
  }
}

</mosaic_0001>

<bundles_post_ra>
// kernel: tpu_custom_call.1
= control target key start
LH: loop header
LB: loop body
LE: loop exit
PB: predicated region body
PF: predicated region fallthrough
CT: control target
= control target key end

     0   :  { %8 = vsyncpa [#allocation3], 0  ;;  %s247_s0 = inlined_call_operand.vmem [shape: f32[8,32], index: 0, kind: input, shape index: {}]   ;;  %s248_s1 = inlined_call_operand.hbm [shape: f32[8,32], index: 1, kind: input, shape index: {}]   ;;  %s249_s2 = inlined_call_operand.vmem [shape: f32[8,1], index: 2, kind: input, shape index: {}]   ;;  %s250_s3 = inlined_call_operand.hbm [shape: f32[8,8], index: 3, kind: output, shape index: {}]  }
   0x1   :  { %9 = vsyncpa [#allocation4], 0  ;;  %s192_s12 = smov [#allocation2]   ;;  %s144_s16 = scalar_lea.hbm %s248_s1, 128 }
   0x2   :  { %s18_s13 = sshll.u32 %s192_s12, 4  ;;  %p145_p0 = scmp.ne.s32.totalorder %s248_s1, %s144_s16  ;;  %s19_s13 = int_to_ptr.vmem [resolvable:$true] %s18_s13 }
   0x3   :  { %p148_p1 = scmp.lt.u32.totalorder %s144_s16, %s248_s1 }
   0x5   :  { %p150_p2 = pnand %p148_p1, %p145_p0 }
   0x7   :  { %153 = shalt.err (!%p150_p2)
}
   0x8   :  { %s154_s21 = scalar_lea.vmem %s19_s13, 128  ;;  %p159_p4 = scmp.lt.s32.totalorder %s19_s13, %s19_s13 }
   0x9   :  { %p155_p3 = scmp.ne.s32.totalorder %s19_s13, %s154_s21  ;;  %p160_p5 = scmp.lt.s32.totalorder %s154_s21, %s154_s21 }
   0xb   :  { %p161_p6 = por %p160_p5, %p159_p4 }
   0xd   :  { %p162_p7 = pnand %p161_p6, %p155_p3 }
   0xf   :  { %165 = shalt.err (!%p162_p7)
}
  0x10   :  { %21 = dma.hbm_to_vmem [thread:$0]  %s248_s1, 128, %s19_s13, [#allocation3]  }
  0x11   :  { %188 = dma.done.wait [#allocation3], 128  }
  0x12   :  { %189 = vsyncadd [#allocation3], 4294967168  ;;  %v193_v0 = vmov 0.0   ;;  %vm194_vm0 = vmmov 0   ;;  %v195_v1 = vmov 0   ;;  %vm35_vm1 = vcmask 261120  }
  0x13   :  { %133 = vmatprep.subr.mxu0 %v193_v0  ;;  %135 = vmatprep.mubr.msk.f32.mxu0 %vm194_vm0, %v193_v0  ;;  %v28_v2 = vld [vmem:[%s247_s0] sm:$0xff]  ;;  %s196_s1 = smov [#allocation5]   ;;  %vm112_vm2 = vcmask 64512  }
  0x14   :  { %143 = vset.pattern.permute.xlu0 %v195_v1  ;;  %v29_v3 = vld [vmem:[%s249_s2] sm:$0xff]  ;;  %134 = vmatpush3.xpose.msk.msra.mxu0 %vm35_vm1, %v28_v2  ;;  %s120_s28 = sshll.u32 %s196_s1, 4  ;;  %s121_s28 = int_to_ptr.vmem [resolvable:$true] %s120_s28 }
  0x15   :  { %v27_v4 = vld [vmem:[#allocation2] sm:$0xff]  ;;  %32 = vperm.xlu0 %143, %v29_v3   ;;  %s166_s29 = scalar_lea.vmem %s121_s28, 128  ;;  %p171_p9 = scmp.lt.s32.totalorder %s121_s28, %s121_s28 }
  0x16   :  { %p167_p8 = scmp.ne.s32.totalorder %s121_s28, %s166_s29  ;;  %p172_p10 = scmp.lt.s32.totalorder %s166_s29, %s166_s29 }
  0x17   :  { %136 = vmatmul.mubr.msk.f32.vlgmr.msra.gmra.mrb[0].mxu0 %vm35_vm1, %v27_v4 }
  0x18   :  { %p173_p11 = por %p172_p10, %p171_p9 }
  0x1a   :  { %p174_p12 = pnand %p173_p11, %p167_p8 }
  0x94   :  { %v33_v5 = vpop.permute.xlu0 %32 }
  0xea   :  { %v108_v6 = vpop.f32.mrb[0].mxu0 }
  0xeb   :  { %v109_v7 = vadd.f32 %v108_v6, %v33_v5  ;;  %v137_v8 = vpop.f32.mrb[1].mxu0 }
  0xed   :  { %113 = vst.msk [vmem:[#allocation5] sm:$0xff] %vm112_vm2, %v109_v7 }
  0xee   :  { %177 = shalt.err (!%p174_p12)
}
  0xef   :  { %s178_s30 = scalar_lea.hbm %s250_s3, 128 }
  0xf0   :  { %p179_p13 = scmp.ne.s32.totalorder %s250_s3, %s178_s30  ;;  %p182_p0 = scmp.lt.u32.totalorder %s178_s30, %s250_s3 }
  0xf2   :  { %p184_p1 = pnand %p182_p0, %p179_p13 }
  0xf4   :  { %187 = shalt.err (!%p184_p1)
}
  0xf5   :  { %123 = dma.vmem_to_hbm [thread:$0]  %s121_s28, 128, %s250_s3, [#allocation4]  }
  0xf6   :  { %190 = dma.done.wait [#allocation4], 128  }
  0xf7   :  { %191 = vsyncadd [#allocation4], 4294967168 }
  0xf8   :  { %127 = vsyncpa [#allocation3], 1 }
  0xf9   :  { %128 = vsyncpa [#allocation4], 1 }

</bundles_post_ra>
